<compile_context>
chip_gen: v7x
topology: tpu7x:2x2x1
jax: 0.10.0
libtpu: 0.0.40
codegen_flags: <defaults>
</compile_context>

<pallas_src>
import numpy as np

import jax
import jax.numpy as jnp
from jax.experimental import pallas as pl
from jax.experimental.pallas import tpu as pltpu


def _banded_conv_weights(w_hwio, W):
    """Re-lay a 3x3 HWIO conv weight into one wide banded matrix.

    Activation rows use the x-major lane layout  lane = x*Cin + ci, x in [0,W);
    output lanes use                             lane = x*Cout + co.
    Horizontal 'same' zero-padding is baked in (out-of-range kx taps omitted),
    so the matmul operand is the *unpadded* W*Cin-lane row.

    Returns G of shape (W*Cin, 3*W*Cout); band ky lives in output columns
    [ky*W*Cout, (ky+1)*W*Cout) and
        out[yo, xo*Cout+co] = sum_ky  (row[yo+ky-1] @ G)[ky*W*Cout + xo*Cout+co]
    i.e. the ky row-shifts are applied by the caller (vertical 'same' padding =
    zero halo rows on the operand).
    """
    _, _, Cin, Cout = w_hwio.shape
    xo = np.arange(W)
    bands = []
    for ky in range(3):
        g = jnp.zeros((W, Cin, W, Cout), w_hwio.dtype)      # [xi, ci, xo, co]
        for kx in range(3):
            xi = xo + kx - 1
            m = (xi >= 0) & (xi < W)
            tap = jnp.broadcast_to(w_hwio[ky, kx][None, :, :],
                                   (int(m.sum()), Cin, Cout))
            g = g.at[xi[m], :, xo[m], :].set(tap)
        bands.append(g.reshape(W * Cin, W * Cout))
    return jnp.concatenate(bands, axis=1)                   # (W*Cin, 3*W*Cout)


def _block_fused_kernel(x_ref, g1_ref, b1_ref, g2_ref, b2_ref,
                        y_ref, stats_ref, hpad_ref):
    # x_ref:     (1, H+2, W*Cin)   bf16  y-padded, x-major lane-dense input slab
    # g1_ref:    (W*Cin,  3*W*Cout) bf16 banded conv1 weights (x-padding baked in)
    # g2_ref:    (W*Cout, 3*W*Cout) bf16 banded conv2 weights
    # b1_ref/b2_ref: (1, W*Cout) f32 lane-tiled biases
    # y_ref:     (1, H, W*Cout) f32   pre-BN activation relu(conv2(relu(conv1)))
    # stats_ref: (1, 2, W*Cout) f32   per-step [row-sum, row-sum-of-squares]
    # hpad_ref:  (H+2, W*Cout) bf16 scratch (y-padded conv2 operand)
    Hp = x_ref.shape[1]
    H = Hp - 2
    WC = y_ref.shape[2]

    # ---- conv1: one wide MXU dot (M=H+2, K=W*Cin, N=3*W*Cout), bf16 in,
    # f32 accumulate; combine the three ky bands with static row shifts.
    t = jnp.dot(x_ref[0], g1_ref[...], preferred_element_type=jnp.float32)
    h = (t[0:H, 0:WC] + t[1:H + 1, WC:2 * WC] + t[2:H + 2, 2 * WC:3 * WC]
         + b1_ref[...])
    h = jnp.maximum(h, 0.0)                                  # (H, WC) f32

    # ---- stage conv2 operand: single f32->bf16 cast, full-lane-width store,
    # zero halo rows provide the vertical 'same' padding.
    hpad_ref[...] = jnp.zeros_like(hpad_ref)
    hpad_ref[1:H + 1, :] = h.astype(jnp.bfloat16)

    # ---- conv2: one wide MXU dot (M=H+2, K=W*Cout, N=3*W*Cout).
    s = jnp.dot(hpad_ref[...], g2_ref[...], preferred_element_type=jnp.float32)
    y = (s[0:H, 0:WC] + s[1:H + 1, WC:2 * WC] + s[2:H + 2, 2 * WC:3 * WC]
         + b2_ref[...])
    y = jnp.maximum(y, 0.0)                                  # (H, WC) f32

    # ---- outputs: pre-BN activation + partial BatchNorm statistics.
    # (Stats finalize + normalization happen outside the kernel so the batch
    #  grid axis can stay truly "parallel" across TensorCores.)
    y_ref[0] = y
    stats_ref[0, 0:1, :] = jnp.sum(y, axis=0, keepdims=True)
    stats_ref[0, 1:2, :] = jnp.sum(y * y, axis=0, keepdims=True)


@jax.jit
def block_forward(x_nchw, params):
    """Forward pass of Block; accepts/returns PyTorch-style NCHW."""
    x = x_nchw.astype(jnp.float32)
    N, Cin, H, W = x.shape
    Cout = params["b1"].shape[0]
    WC = W * Cout
    WCin = W * Cin
    Hp = H + 2

    # ---- parameter re-layout (tiny one-time XLA ops on parameters only) -----
    g1 = _banded_conv_weights(params["w1"].astype(jnp.float32), W).astype(jnp.bfloat16)
    g2 = _banded_conv_weights(params["w2"].astype(jnp.float32), W).astype(jnp.bfloat16)
    b1_row = jnp.tile(params["b1"].astype(jnp.float32), W).reshape(1, WC)
    b2_row = jnp.tile(params["b2"].astype(jnp.float32), W).reshape(1, WC)

    # ---- input re-layout: NCHW -> y-padded, x-major, lane-dense bf16 slab ----
    x_slab = jnp.transpose(x, (0, 2, 3, 1)).reshape(N, H, WCin)
    x_slab = jnp.pad(x_slab, ((0, 0), (1, 1), (0, 0))).astype(jnp.bfloat16)

    flops = 2 * N * Hp * (3 * WC) * (WCin + WC)
    bytes_accessed = (x_slab.size * 2 + g1.size * 2 + g2.size * 2
                      + (b1_row.size + b2_row.size) * 4
                      + N * H * WC * 4 + N * 2 * WC * 4)

    y_slab, stats = pl.pallas_call(
        _block_fused_kernel,
        grid=(N,),
        out_shape=(jax.ShapeDtypeStruct((N, H, WC), jnp.float32),
                   jax.ShapeDtypeStruct((N, 2, WC), jnp.float32)),
        in_specs=[
            pl.BlockSpec((1, Hp, WCin), lambda n: (n, 0, 0)),
            pl.BlockSpec((WCin, 3 * WC), lambda n: (0, 0)),
            pl.BlockSpec((1, WC), lambda n: (0, 0)),
            pl.BlockSpec((WC, 3 * WC), lambda n: (0, 0)),
            pl.BlockSpec((1, WC), lambda n: (0, 0)),
        ],
        out_specs=(
            pl.BlockSpec((1, H, WC), lambda n: (n, 0, 0)),
            pl.BlockSpec((1, 2, WC), lambda n: (n, 0, 0)),
        ),
        scratch_shapes=[pltpu.VMEM((Hp, WC), jnp.bfloat16)],
        compiler_params=pltpu.CompilerParams(
            dimension_semantics=("parallel",)),
        cost_estimate=pl.CostEstimate(flops=flops, transcendentals=0,
                                      bytes_accessed=bytes_accessed),
    )(x_slab, g1, b1_row, g2, b2_row)

    # ---- BatchNorm2d finalize (training mode): global batch stats over
    # (N,H,W), biased variance, eps=1e-5. The reduction is over a (N,2,WC)
    # array and the application is a single fused elementwise FMA — the tiny
    # "2nd pass" that lets the kernel's batch axis stay parallel across cores.
    count = float(N * H * W)
    ch = stats.sum(axis=0).reshape(2, W, Cout).sum(axis=1)        # (2, Cout)
    mean = ch[0] / count
    var = ch[1] / count - mean * mean                             # biased var
    scale = params["gamma"].astype(jnp.float32) * jax.lax.rsqrt(var + 1e-5)
    shift = params["beta"].astype(jnp.float32) - mean * scale

    y = y_slab.reshape(N, H, W, Cout) * scale + shift
    return jnp.transpose(y, (0, 3, 1, 2))                         # back to NCHW


def init_params(key, in_ch, out_ch):
    k1, k2, k3, k4, k5, k6 = jax.random.split(key, 6)
    return {
        # conv weights stored HWIO (PyTorch stores OIHW: (out, in, 3, 3))
        "w1": 0.1 * jax.random.normal(k1, (3, 3, in_ch, out_ch), jnp.float32),
        "b1": 0.1 * jax.random.normal(k2, (out_ch,), jnp.float32),
        "w2": 0.1 * jax.random.normal(k3, (3, 3, out_ch, out_ch), jnp.float32),
        "b2": 0.1 * jax.random.normal(k4, (out_ch,), jnp.float32),
        "gamma": 1.0 + 0.1 * jax.random.normal(k5, (out_ch,), jnp.float32),
        "beta": 0.1 * jax.random.normal(k6, (out_ch,), jnp.float32),
    }


def _reference(x, params):
    """Pure-JAX reference of the Block forward (f32)."""
    dn = ("NCHW", "HWIO", "NCHW")
    h = jax.lax.conv_general_dilated(x, params["w1"], (1, 1), "SAME",
                                     dimension_numbers=dn)
    h = jnp.maximum(h + params["b1"][None, :, None, None], 0.0)
    y = jax.lax.conv_general_dilated(h, params["w2"], (1, 1), "SAME",
                                     dimension_numbers=dn)
    y = jnp.maximum(y + params["b2"][None, :, None, None], 0.0)
    mean = y.mean(axis=(0, 2, 3))
    var = y.var(axis=(0, 2, 3))                                   # biased
    scale = params["gamma"] * jax.lax.rsqrt(var + 1e-5)
    shift = params["beta"] - mean * scale
    return y * scale[None, :, None, None] + shift[None, :, None, None]


if __name__ == "__main__":
    key = jax.random.PRNGKey(0)
    kx, kp = jax.random.split(key)

    N, IN_CH, OUT_CH, H, W = 2, 4, 8, 16, 16
    x = jax.random.normal(kx, (N, IN_CH, H, W), jnp.float32)
    params = init_params(kp, IN_CH, OUT_CH)

    # TODO(synk): BatchNorm running_mean/running_var side-effect update
    # (training-mode buffer mutation) is not modeled; only the forward output.
    out = block_forward(x, params)
    jax.block_until_ready(out)

    assert out.shape == (N, OUT_CH, H, W), out.shape
    assert bool(jnp.all(jnp.isfinite(out)))

    # Loose tolerance: MXU operands are bf16 (f32 accumulation), ~1% rel error.
    ref = _reference(x, params)
    assert bool(jnp.allclose(out, ref, rtol=5e-2, atol=5e-2)), float(
        jnp.max(jnp.abs(out - ref)))

    print("KERNEL_OK")
</pallas_src>

<mosaic_0001>
module attributes {stable_mosaic.version = 11 : i64} {
  func.func @_block_fused_kernel(%arg0: i32, %arg1: memref<1x18x64xbf16, #tpu.memory_space<vmem>>, %arg2: memref<64x384xbf16, #tpu.memory_space<vmem>>, %arg3: memref<1x128xf32, #tpu.memory_space<vmem>>, %arg4: memref<128x384xbf16, #tpu.memory_space<vmem>>, %arg5: memref<1x128xf32, #tpu.memory_space<vmem>>, %arg6: memref<1x16x128xf32, #tpu.memory_space<vmem>>, %arg7: memref<1x2x128xf32, #tpu.memory_space<vmem>>, %arg8: memref<18x128xbf16, #tpu.memory_space<vmem>>) attributes {dimension_semantics = [#tpu.dimension_semantics<parallel>], iteration_bounds = array<i64: 2>, scalar_prefetch = 0 : i64, scratch_operands = 1 : i64, tpu.core_type = #tpu.core_type<tc>, window_params = [{transform_indices = @transform_0, window_bounds = array<i64: 1, 18, 64>}, {pipeline_mode = #tpu.pipeline_mode<synchronous>, transform_indices = @transform_1, window_bounds = array<i64: 64, 384>}, {pipeline_mode = #tpu.pipeline_mode<synchronous>, transform_indices = @transform_2, window_bounds = array<i64: 1, 128>}, {pipeline_mode = #tpu.pipeline_mode<synchronous>, transform_indices = @transform_3, window_bounds = array<i64: 128, 384>}, {pipeline_mode = #tpu.pipeline_mode<synchronous>, transform_indices = @transform_4, window_bounds = array<i64: 1, 128>}, {transform_indices = @transform_5, window_bounds = array<i64: 1, 16, 128>}, {transform_indices = @transform_6, window_bounds = array<i64: 1, 2, 128>}]} {
    %c0 = arith.constant 0 : index
    %c0_0 = arith.constant 0 : index
    %c0_1 = arith.constant 0 : index
    %0 = vector.load %arg1[%c0, %c0_0, %c0_1] : memref<1x18x64xbf16, #tpu.memory_space<vmem>>, vector<1x18x64xbf16>
    %1 = vector.shape_cast %0 : vector<1x18x64xbf16> to vector<18x64xbf16>
    %c0_2 = arith.constant 0 : index
    %c0_3 = arith.constant 0 : index
    %2 = vector.load %arg2[%c0_2, %c0_3] : memref<64x384xbf16, #tpu.memory_space<vmem>>, vector<64x384xbf16>
    %cst = arith.constant dense<0.000000e+00> : vector<18x384xf32>
    %3 = tpu.matmul %1, %2, %cst {dimension_numbers = #tpu.dot_dimension_numbers<[1], [0], [0], [1], [0, 0, 1, 1], [], []>} : vector<18x64xbf16>, vector<64x384xbf16>, vector<18x384xf32> -> vector<18x384xf32>
    %4 = vector.extract_strided_slice %3 {offsets = [0, 0], sizes = [16, 128], strides = [1, 1]} : vector<18x384xf32> to vector<16x128xf32>
    %5 = vector.extract_strided_slice %3 {offsets = [1, 128], sizes = [16, 128], strides = [1, 1]} : vector<18x384xf32> to vector<16x128xf32>
    %6 = arith.addf %4, %5 : vector<16x128xf32>
    %7 = vector.extract_strided_slice %3 {offsets = [2, 256], sizes = [16, 128], strides = [1, 1]} : vector<18x384xf32> to vector<16x128xf32>
    %8 = arith.addf %6, %7 : vector<16x128xf32>
    %c0_4 = arith.constant 0 : index
    %c0_5 = arith.constant 0 : index
    %9 = vector.load %arg3[%c0_4, %c0_5] : memref<1x128xf32, #tpu.memory_space<vmem>>, vector<1x128xf32>
    %10 = vector.broadcast %9 : vector<1x128xf32> to vector<16x128xf32>
    %11 = arith.addf %8, %10 : vector<16x128xf32>
    %cst_6 = arith.constant 0.000000e+00 : f32
    %12 = vector.broadcast %cst_6 : f32 to vector<16x128xf32>
    %13 = arith.maximumf %11, %12 : vector<16x128xf32>
    %cst_7 = arith.constant 0.000000e+00 : bf16
    %14 = vector.broadcast %cst_7 : bf16 to vector<18x128xbf16>
    %c0_8 = arith.constant 0 : index
    %c0_9 = arith.constant 0 : index
    %15 = vector.load %arg8[%c0_8, %c0_9] : memref<18x128xbf16, #tpu.memory_space<vmem>>, vector<18x128xbf16>
    tpu.vector_store %arg8[%c0_8, %c0_9], %14 {strides = array<i32>} : memref<18x128xbf16, #tpu.memory_space<vmem>>, vector<18x128xbf16>,
    %16 = arith.truncf %13 : vector<16x128xf32> to vector<16x128xbf16>
    %c1 = arith.constant 1 : index
    %c0_10 = arith.constant 0 : index
    %17 = vector.load %arg8[%c1, %c0_10] : memref<18x128xbf16, #tpu.memory_space<vmem>>, vector<16x128xbf16>
    tpu.vector_store %arg8[%c1, %c0_10], %16 {strides = array<i32>} : memref<18x128xbf16, #tpu.memory_space<vmem>>, vector<16x128xbf16>,
    %c0_11 = arith.constant 0 : index
    %c0_12 = arith.constant 0 : index
    %18 = vector.load %arg8[%c0_11, %c0_12] : memref<18x128xbf16, #tpu.memory_space<vmem>>, vector<18x128xbf16>
    %c0_13 = arith.constant 0 : index
    %c0_14 = arith.constant 0 : index
    %19 = vector.load %arg4[%c0_13, %c0_14] : memref<128x384xbf16, #tpu.memory_space<vmem>>, vector<128x384xbf16>
    %cst_15 = arith.constant dense<0.000000e+00> : vector<18x384xf32>
    %20 = tpu.matmul %18, %19, %cst_15 {dimension_numbers = #tpu.dot_dimension_numbers<[1], [0], [0], [1], [0, 0, 1, 1], [], []>} : vector<18x128xbf16>, vector<128x384xbf16>, vector<18x384xf32> -> vector<18x384xf32>
    %21 = vector.extract_strided_slice %20 {offsets = [0, 0], sizes = [16, 128], strides = [1, 1]} : vector<18x384xf32> to vector<16x128xf32>
    %22 = vector.extract_strided_slice %20 {offsets = [1, 128], sizes = [16, 128], strides = [1, 1]} : vector<18x384xf32> to vector<16x128xf32>
    %23 = arith.addf %21, %22 : vector<16x128xf32>
    %24 = vector.extract_strided_slice %20 {offsets = [2, 256], sizes = [16, 128], strides = [1, 1]} : vector<18x384xf32> to vector<16x128xf32>
    %25 = arith.addf %23, %24 : vector<16x128xf32>
    %c0_16 = arith.constant 0 : index
    %c0_17 = arith.constant 0 : index
    %26 = vector.load %arg5[%c0_16, %c0_17] : memref<1x128xf32, #tpu.memory_space<vmem>>, vector<1x128xf32>
    %27 = vector.broadcast %26 : vector<1x128xf32> to vector<16x128xf32>
    %28 = arith.addf %25, %27 : vector<16x128xf32>
    %cst_18 = arith.constant 0.000000e+00 : f32
    %29 = vector.broadcast %cst_18 : f32 to vector<16x128xf32>
    %30 = arith.maximumf %28, %29 : vector<16x128xf32>
    %c0_19 = arith.constant 0 : index
    %c0_20 = arith.constant 0 : index
    %c0_21 = arith.constant 0 : index
    %31 = vector.load %arg6[%c0_19, %c0_20, %c0_21] : memref<1x16x128xf32, #tpu.memory_space<vmem>>, vector<1x16x128xf32>
    %32 = vector.shape_cast %31 : vector<1x16x128xf32> to vector<16x128xf32>
    %33 = vector.shape_cast %30 : vector<16x128xf32> to vector<1x16x128xf32>
    tpu.vector_store %arg6[%c0_19, %c0_20, %c0_21], %33 {strides = array<i32>} : memref<1x16x128xf32, #tpu.memory_space<vmem>>, vector<1x16x128xf32>,
    %cst_22 = arith.constant dense<0.000000e+00> : vector<128xf32>
    %34 = vector.multi_reduction <add>, %30, %cst_22 [0] : vector<16x128xf32> to vector<128xf32>
    %35 = vector.shape_cast %34 : vector<128xf32> to vector<1x128xf32>
    %c0_23 = arith.constant 0 : index
    %c0_24 = arith.constant 0 : index
    %c0_25 = arith.constant 0 : index
    %36 = vector.load %arg7[%c0_23, %c0_24, %c0_25] : memref<1x2x128xf32, #tpu.memory_space<vmem>>, vector<1x1x128xf32>
    %37 = vector.shape_cast %36 : vector<1x1x128xf32> to vector<1x128xf32>
    %38 = vector.shape_cast %35 : vector<1x128xf32> to vector<1x1x128xf32>
    tpu.vector_store %arg7[%c0_23, %c0_24, %c0_25], %38 {strides = array<i32>} : memref<1x2x128xf32, #tpu.memory_space<vmem>>, vector<1x1x128xf32>,
    %39 = arith.mulf %30, %30 : vector<16x128xf32>
    %cst_26 = arith.constant dense<0.000000e+00> : vector<128xf32>
    %40 = vector.multi_reduction <add>, %39, %cst_26 [0] : vector<16x128xf32> to vector<128xf32>
    %41 = vector.shape_cast %40 : vector<128xf32> to vector<1x128xf32>
    %c0_27 = arith.constant 0 : index
    %c1_28 = arith.constant 1 : index
    %c0_29 = arith.constant 0 : index
    %42 = vector.load %arg7[%c0_27, %c1_28, %c0_29] : memref<1x2x128xf32, #tpu.memory_space<vmem>>, vector<1x1x128xf32>
    %43 = vector.shape_cast %42 : vector<1x1x128xf32> to vector<1x128xf32>
    %44 = vector.shape_cast %41 : vector<1x128xf32> to vector<1x1x128xf32>
    tpu.vector_store %arg7[%c0_27, %c1_28, %c0_29], %44 {strides = array<i32>} : memref<1x2x128xf32, #tpu.memory_space<vmem>>, vector<1x1x128xf32>,
    return
  }
  func.func @transform_0(%arg0: i32) -> (i32, i32, i32) {
    %c0_i32 = arith.constant 0 : i32
    %c0_i32_0 = arith.constant 0 : i32
    %c0_i32_1 = arith.constant 0 : i32
    return %arg0, %c0_i32, %c0_i32_0 : i32, i32, i32
  }
  func.func @transform_1(%arg0: i32) -> (i32, i32) {
    %c0_i32 = arith.constant 0 : i32
    %c0_i32_0 = arith.constant 0 : i32
    %c0_i32_1 = arith.constant 0 : i32
    return %c0_i32, %c0_i32_0 : i32, i32
  }
  func.func @transform_2(%arg0: i32) -> (i32, i32) {
    %c0_i32 = arith.constant 0 : i32
    %c0_i32_0 = arith.constant 0 : i32
    %c0_i32_1 = arith.constant 0 : i32
    return %c0_i32, %c0_i32_0 : i32, i32
  }
  func.func @transform_3(%arg0: i32) -> (i32, i32) {
    %c0_i32 = arith.constant 0 : i32
    %c0_i32_0 = arith.constant 0 : i32
    %c0_i32_1 = arith.constant 0 : i32
    return %c0_i32, %c0_i32_0 : i32, i32
  }
  func.func @transform_4(%arg0: i32) -> (i32, i32) {
    %c0_i32 = arith.constant 0 : i32
    %c0_i32_0 = arith.constant 0 : i32
    %c0_i32_1 = arith.constant 0 : i32
    return %c0_i32, %c0_i32_0 : i32, i32
  }
  func.func @transform_5(%arg0: i32) -> (i32, i32, i32) {
    %c0_i32 = arith.constant 0 : i32
    %c0_i32_0 = arith.constant 0 : i32
    %c0_i32_1 = arith.constant 0 : i32
    return %arg0, %c0_i32, %c0_i32_0 : i32, i32, i32
  }
  func.func @transform_6(%arg0: i32) -> (i32, i32, i32) {
    %c0_i32 = arith.constant 0 : i32
    %c0_i32_0 = arith.constant 0 : i32
    %c0_i32_1 = arith.constant 0 : i32
    return %arg0, %c0_i32, %c0_i32_0 : i32, i32, i32
  }
}

</mosaic_0001>

<bundles_post_ra>
// kernel: tile.13
= control target key start
LH: loop header
LB: loop body
LE: loop exit
PB: predicated region body
PF: predicated region fallthrough
CT: control target
= control target key end

     0   :  { %s28_s0 = inlined_call_operand.vmem [shape: f32[8], index: 0, kind: input, shape index: {}]   ;;  %s29_s1 = inlined_call_operand.vmem [shape: f32[16,8], index: 1, kind: output, shape index: {}]  }
   0x1   :  { %v4_v0 = vld [vmem:[%s28_s0] ss:$0 sm:$0xff] }
   0x2   :  { %5 = vst [vmem:[%s29_s1] sm:$0xff] %v4_v0  ;;  %8 = vst [vmem:[%s29_s1 + $0x8] sm:$0xff] %v4_v0 }

// kernel: tile.14
= control target key start
LH: loop header
LB: loop body
LE: loop exit
PB: predicated region body
PF: predicated region fallthrough
CT: control target
= control target key end

     0   :  { %s131_s10 = smov 120   ;;  %s132_s11 = smov 104   ;;  %vm3_vm0 = vcmask 64512   ;;  %vm9_vm1 = vcmask 1048512   ;;  %vm15_vm2 = vcmask 982912   ;;  %vm21_vm3 = vcmask 917312   ;;  %s207_s0 = inlined_call_operand.vmem [shape: f32[16,8], index: 0, kind: input, shape index: {}]   ;;  %s208_s1 = inlined_call_operand.vmem [shape: f32[1,128], index: 1, kind: output, shape index: {}]  }
   0x1   :  { %v101_v0 = vld [vmem:[%s207_s0 + $0xf] sm:$0x1]   ;;  %v103_v1 = vld [vmem:[%s207_s0 + $0xd] sm:$0x1]   ;;  %v102_v2 = vld [vmem:[%s207_s0 + $0xe] sm:$0x1]  }
   0x2   :  { %7 = vrot.lane.b32.xlu0 %v101_v0, %s131_s10  ;;  %19 = vrot.lane.b32.xlu1 %v103_v1, %s132_s11  ;;  %v104_v3 = vld [vmem:[%s207_s0 + $0xc] sm:$0x1]   ;;  %s133_s16 = smov 112   ;;  %s134_s17 = smov 96   ;;  %v105_v4 = vld [vmem:[%s207_s0 + $0xb] sm:$0x1]  }
   0x3   :  { %v106_v5 = vld [vmem:[%s207_s0 + $0xa] sm:$0x1]   ;;  %v2_v6 = vld [vmem:[%s207_s0] sm:$0x1]   ;;  %s135_s24 = smov 88   ;;  %s136_s25 = smov 80  }
   0x4   :  { %4 = vst.msk [vmem:[#allocation0] sm:$0x1] %vm3_vm0, %v2_v6   ;;  %v107_v7 = vld [vmem:[%s207_s0 + $0x9] sm:$0x1]   ;;  %v108_v8 = vld [vmem:[%s207_s0 + $0x8] sm:$0x1]  }
   0x5   :  { %s137_s30 = smov 72   ;;  %s138_s2 = smov 64   ;;  %v109_v9 = vld [vmem:[%s207_s0 + $0x7] sm:$0x1]   ;;  %v110_v10 = vld [vmem:[%s207_s0 + $0x6] sm:$0x1]  }
   0x6   :  { %13 = vrot.lane.b32.xlu0 %v102_v2, %s133_s16  ;;  %25 = vrot.lane.b32.xlu1 %v104_v3, %s134_s17  ;;  %s139_s7 = smov 56   ;;  %s140_s8 = smov 48   ;;  %v111_v11 = vld [vmem:[%s207_s0 + $0x5] sm:$0x1]   ;;  %v112_v12 = vld [vmem:[%s207_s0 + $0x4] sm:$0x1]  }
   0x7   :  { %s141_s13 = smov 40   ;;  %s142_s14 = smov 32   ;;  %v113_v13 = vld [vmem:[%s207_s0 + $0x3] sm:$0x1]   ;;  %v114_v14 = vld [vmem:[%s207_s0 + $0x2] sm:$0x1]  }
   0x8   :  { %s143_s19 = smov 24   ;;  %s144_s20 = smov 16   ;;  %v115_v15 = vld [vmem:[%s207_s0 + $0x1] sm:$0x1]   ;;  %vm27_vm4 = vcmask 851712   ;;  %vm33_vm5 = vcmask 786112  }
   0x9   :  { %s145_s0 = smov 8   ;;  %vm39_vm6 = vcmask 720512   ;;  %vm45_vm7 = vcmask 654912   ;;  %vm51_vm8 = vcmask 589312   ;;  %vm57_vm9 = vcmask 523712  }
   0xa   :  { %31 = vrot.lane.b32.xlu0 %v105_v4, %s135_s24  ;;  %37 = vrot.lane.b32.xlu1 %v106_v5, %s136_s25  ;;  %vm63_vm10 = vcmask 458112   ;;  %vm69_vm11 = vcmask 392512   ;;  %vm75_vm12 = vcmask 326912   ;;  %vm81_vm13 = vcmask 261312  }
   0xb   :  { %vm87_vm14 = vcmask 195712   ;;  %vm93_vm15 = vcmask 130112  }
   0xe   :  { %43 = vrot.lane.b32.xlu0 %v107_v7, %s137_s30  ;;  %49 = vrot.lane.b32.xlu1 %v108_v8, %s138_s2 }
  0x12   :  { %55 = vrot.lane.b32.xlu0 %v109_v9, %s139_s7  ;;  %61 = vrot.lane.b32.xlu1 %v110_v10, %s140_s8 }
  0x16   :  { %67 = vrot.lane.b32.xlu0 %v111_v11, %s141_s13  ;;  %73 = vrot.lane.b32.xlu1 %v112_v12, %s142_s14 }
  0x1a   :  { %79 = vrot.lane.b32.xlu0 %v113_v13, %s143_s19  ;;  %85 = vrot.lane.b32.xlu1 %v114_v14, %s144_s20 }
  0x1e   :  { %91 = vrot.lane.b32.xlu0 %v115_v15, %s145_s0 }
  0x74   :  { %v8_v16 = vpop.permute.xlu0 %7   ;;  %v20_v17 = vpop.permute.xlu1 %19  }
  0x75   :  { %10 = vst.msk [vmem:[#allocation0] sm:$0x1] %vm9_vm1, %v8_v16  }
  0x78   :  { %v14_v18 = vpop.permute.xlu0 %13   ;;  %v26_v19 = vpop.permute.xlu1 %25  }
  0x79   :  { %16 = vst.msk [vmem:[#allocation0] sm:$0x1] %vm15_vm2, %v14_v18  }
  0x7a   :  { %22 = vst.msk [vmem:[#allocation0] sm:$0x1] %vm21_vm3, %v20_v17  }
  0x7b   :  { %28 = vst.msk [vmem:[#allocation0] sm:$0x1] %vm27_vm4, %v26_v19  }
  0x7c   :  { %v32_v20 = vpop.permute.xlu0 %31   ;;  %v38_v21 = vpop.permute.xlu1 %37  }
  0x7d   :  { %34 = vst.msk [vmem:[#allocation0] sm:$0x1] %vm33_vm5, %v32_v20  }
  0x7e   :  { %40 = vst.msk [vmem:[#allocation0] sm:$0x1] %vm39_vm6, %v38_v21  }
  0x80   :  { %v44_v22 = vpop.permute.xlu0 %43   ;;  %v50_v23 = vpop.permute.xlu1 %49  }
  0x81   :  { %46 = vst.msk [vmem:[#allocation0] sm:$0x1] %vm45_vm7, %v44_v22  }
  0x82   :  { %52 = vst.msk [vmem:[#allocation0] sm:$0x1] %vm51_vm8, %v50_v23  }
  0x84   :  { %v56_v24 = vpop.permute.xlu0 %55   ;;  %v62_v25 = vpop.permute.xlu1 %61  }
  0x85   :  { %58 = vst.msk [vmem:[#allocation0] sm:$0x1] %vm57_vm9, %v56_v24  }
  0x86   :  { %64 = vst.msk [vmem:[#allocation0] sm:$0x1] %vm63_vm10, %v62_v25  }
  0x88   :  { %v68_v26 = vpop.permute.xlu0 %67   ;;  %v74_v27 = vpop.permute.xlu1 %73  }
  0x89   :  { %70 = vst.msk [vmem:[#allocation0] sm:$0x1] %vm69_vm11, %v68_v26  }
  0x8a   :  { %76 = vst.msk [vmem:[#allocation0] sm:$0x1] %vm75_vm12, %v74_v27  }
  0x8c   :  { %v80_v28 = vpop.permute.xlu0 %79   ;;  %v86_v29 = vpop.permute.xlu1 %85  }
  0x8d   :  { %82 = vst.msk [vmem:[#allocation0] sm:$0x1] %vm81_vm13, %v80_v28  }
  0x8e   :  { %88 = vst.msk [vmem:[#allocation0] sm:$0x1] %vm87_vm14, %v86_v29  }
  0x90   :  { %v92_v30 = vpop.permute.xlu0 %91  }
  0x91   :  { %94 = vst.msk [vmem:[#allocation0] sm:$0x1] %vm93_vm15, %v92_v30  }
  0x98   :  { %v98_v31 = vld [vmem:[#allocation0] sm:$0x1] }
  0x99   :  { %100 = vst [vmem:[%s208_s1] sm:$0x1] %v98_v31 }

// kernel: block_forward.1
= control target key start
LH: loop header
LB: loop body
LE: loop exit
PB: predicated region body
PF: predicated region fallthrough
CT: control target
= control target key end

     0   :  { %s1169_s21 = smov 0   ;;  %s1327_s0 = inlined_call_operand.vmem [shape: bf16[2,18,64], index: 0, kind: input, shape index: {}]   ;;  %s1328_s1 = inlined_call_operand.vmem [shape: bf16[64,384], index: 1, kind: input, shape index: {}]   ;;  %s1329_s2 = inlined_call_operand.vmem [shape: f32[1,128], index: 2, kind: input, shape index: {}]   ;;  %s1330_s3 = inlined_call_operand.vmem [shape: bf16[128,384], index: 3, kind: input, shape index: {}]   ;;  %s1331_s4 = inlined_call_operand.vmem [shape: f32[1,128], index: 4, kind: input, shape index: {}]   ;;  %s1332_s5 = inlined_call_operand.vmem [shape: f32[2,16,128], index: 5, kind: output, shape index: {0}]   ;;  %s1333_s6 = inlined_call_operand.vmem [shape: f32[2,2,128], index: 6, kind: output, shape index: {1}]  }
   0x1 LB: > { %s953_s22 = sadd.s32 4294967295, %s1131_s21   ;;  %p957_p0 = scmp.ge.s32.totalorder %s1131_s21, 1  ;;  %s1131_s21 = sphi %s1169_s21, %s17_s21  }
   0x2   : > { %p215_p1 = scmp.lt.s32.totalorder %s1131_s21, 3 }
   0x4   : > { %p216_p2 = pnand %p957_p0, %p215_p1 }
   0x5   : > { %v1073_v0 = vld [vmem:[%s1328_s1 + $0x4] ss:$12 sps:$4 sm:$0xff] (!%p216_p2)   ;;  %p249_p3 = scmp.lt.s32.totalorder (!%p216_p2), %s953_s22, 1  ;;  %v1075_v1 = vld [vmem:[%s1328_s1] ss:$12 sps:$4 sm:$0xff] (!%p216_p2)   ;;  %v1133_v2 = vmov (!%p216_p2), 0  }
   0x6   : > { %219 = sbr.rel (%p216_p2) target bundleno = 520 (0x208), region = 40  ;;  %394 = vmatprep.mubr.bf16.mxu0 (!%p216_p2), %v1133_v2  ;;  %499 = vst [vmem:[#allocation2 + $0x8] sm:$0x1] (!%p216_p2), %v1133_v2  ;;  %497 = vst [vmem:[#allocation2] sm:$0xf] (!%p216_p2), %v1133_v2  ;;  %362 = vmatprep.subr.bf16.mxu0 (!%p216_p2), %v1073_v0  ;;  %vm355_vm0 = vcmask (!%p216_p2), 523264  }
   0x7   : > { %498 = vst [vmem:[#allocation2 + $0x4] sm:$0xf] (!%p216_p2), %v1133_v2  ;;  %v1076_v3 = vld [vmem:[%s1328_s1 + $0x8] ss:$12 sps:$4 sm:$0xff] (!%p216_p2)   ;;  %363 = vmatpush1.bf16.msra.mxu0 (!%p216_p2), %v1075_v1  ;;  %v1079_v5 = vld [vmem:[%s1328_s1 + $0x18] ss:$12 sps:$4 sm:$0xff] (!%p216_p2)  }
   0x8   : > { %v1077_v4 = vld [vmem:[%s1328_s1 + $0x1c] ss:$12 sps:$4 sm:$0xff] (!%p216_p2)   ;;  %1031 = vmatprep.subr.bf16.mxu1 (!%p216_p2), %v1076_v3  ;;  %v1080_v6 = vld [vmem:[%s1328_s1 + $0x20] ss:$12 sps:$4 sm:$0xff] (!%p216_p2)   ;;  %v1084_v8 = vld [vmem:[%s1328_s1 + $0x38] ss:$12 sps:$4 sm:$0xff] (!%p216_p2)  }
   0x9   : > { %1032 = vmatpush3.bf16.msra.mxu1 (!%p216_p2), %v1076_v3  ;;  %364 = vmatprep.subr.bf16.mxu0 (!%p216_p2), %v1077_v4  ;;  %v1081_v7 = vld [vmem:[%s1328_s1 + $0x34] ss:$12 sps:$4 sm:$0xff] (!%p216_p2)   ;;  %v1083_v9 = vld [vmem:[%s1328_s1 + $0x30] ss:$12 sps:$4 sm:$0xff] (!%p216_p2)   ;;  %v1085_v10 = vld [vmem:[%s1328_s1 + $0x4c] ss:$12 sps:$4 sm:$0xff] (!%p216_p2)  }
   0xa   : > { %1033 = vmatprep.subr.bf16.mxu1 (!%p216_p2), %v1080_v6  ;;  %v1087_v11 = vld [vmem:[%s1328_s1 + $0x48] ss:$12 sps:$4 sm:$0xff] (!%p216_p2)   ;;  %v1088_v12 = vld [vmem:[%s1328_s1 + $0x50] ss:$12 sps:$4 sm:$0xff] (!%p216_p2)   ;;  %v1091_v16 = vld [vmem:[%s1330_s3] ss:$12 sps:$4 sm:$0xff] (!%p216_p2)  }
   0xb   : > { %365 = vmatpush1.bf16.msra.mxu0 (!%p216_p2), %v1079_v5  ;;  %v1093_v15 = vld [vmem:[%s1330_s3 + $0x4] ss:$12 sps:$4 sm:$0xff] (!%p216_p2)   ;;  %v1094_v17 = vld [vmem:[%s1330_s3 + $0x8] ss:$12 sps:$4 sm:$0xff] (!%p216_p2)   ;;  %v1098_v20 = vld [vmem:[%s1330_s3 + $0x20] ss:$12 sps:$4 sm:$0xff] (!%p216_p2)  }
   0xc   : > { %366 = vmatprep.subr.bf16.mxu0 (!%p216_p2), %v1081_v7  ;;  %v1097_v18 = vld [vmem:[%s1330_s3 + $0x1c] ss:$12 sps:$4 sm:$0xff] (!%p216_p2)   ;;  %v1095_v19 = vld [vmem:[%s1330_s3 + $0x18] ss:$12 sps:$4 sm:$0xff] (!%p216_p2)   ;;  %v1101_v21 = vld [vmem:[%s1330_s3 + $0x34] ss:$12 sps:$4 sm:$0xff] (!%p216_p2)  }
   0xd   : > { %s1335_s22 = smov (!%p249_p3, %s953_s22), 1  ;;  %1034 = vmatpush3.bf16.msra.mxu1 %v1080_v6  ;;  %v1099_v22 = vld [vmem:[%s1330_s3 + $0x30] ss:$12 sps:$4 sm:$0xff]   ;;  %v1102_v23 = vld [vmem:[%s1330_s3 + $0x38] ss:$12 sps:$4 sm:$0xff]   ;;  %vm463_vm1 = vcmask 1046528  }
   0xe   : > { %s1063_s11 = smul.u32 12, %s1335_s22  ;;  %1035 = vmatprep.subr.bf16.mxu1 %v1084_v8  ;;  %v1105_v24 = vld [vmem:[%s1330_s3 + $0x4c] ss:$12 sps:$4 sm:$0xff]   ;;  %v1103_v25 = vld [vmem:[%s1330_s3 + $0x48] ss:$12 sps:$4 sm:$0xff]   ;;  %vm476_vm2 = vcmask 1045504  }
   0xf   : > { %367 = vmatpush1.bf16.msra.mxu0 %v1083_v9  ;;  %v1106_v26 = vld [vmem:[%s1330_s3 + $0x50] ss:$12 sps:$4 sm:$0xff]   ;;  %v1107_v27 = vld [vmem:[%s1330_s3 + $0x60] ss:$12 sps:$4 sm:$0xff]   ;;  %v1110_v29 = vld [vmem:[%s1330_s3 + $0x68] ss:$12 sps:$4 sm:$0xff]  }
  0x10   : > { %s253_s20 = scalar_lea.vmem %s1327_s0, %s1063_s11  ;;  %368 = vmatprep.subr.bf16.mxu0 %v1085_v10  ;;  %v1109_v28 = vld [vmem:[%s1330_s3 + $0x64] ss:$12 sps:$4 sm:$0xff]   ;;  %v1113_v30 = vld [vmem:[%s1330_s3 + $0x7c] ss:$12 sps:$4 sm:$0xff]   ;;  %v1114_v32 = vld [vmem:[%s1330_s3 + $0x80] ss:$12 sps:$4 sm:$0xff]  }
  0x11   : > { %v1089_v13 = vld [vmem:[%s253_s20] sm:$0xff]   ;;  %1036 = vmatpush3.bf16.msra.mxu1 %v1084_v8  ;;  %v1090_v14 = vld [vmem:[%s253_s20 + $0x8] ss:$0 sps:$4 sm:$0x11]   ;;  %v1115_v34 = vld [vmem:[%s1330_s3 + $0x90] ss:$12 sps:$4 sm:$0xff]  }
  0x12   : > { %1039 = vmatprep.mubr.msk.bf16.mxu1 %vm355_vm0, %v1089_v13  ;;  %1037 = vmatprep.subr.bf16.mxu1 %v1088_v12  ;;  %v1111_v31 = vld [vmem:[%s1330_s3 + $0x78] ss:$12 sps:$4 sm:$0xff]   ;;  %v1117_v33 = vld [vmem:[%s1330_s3 + $0x94] ss:$12 sps:$4 sm:$0xff]   ;;  %v1122_v37 = vld [vmem:[%s1330_s3 + $0xb0] ss:$12 sps:$4 sm:$0xff]  }
  0x13   : > { %369 = vmatpush1.bf16.msra.mxu0 %v1087_v11  ;;  %v1118_v35 = vld [vmem:[%s1330_s3 + $0x98] ss:$12 sps:$4 sm:$0xff]   ;;  %v1119_v38 = vld [vmem:[%s1330_s3 + $0xa8] ss:$12 sps:$4 sm:$0xff]   ;;  %v980_v56 = vld [vmem:[%s1329_s2] ss:$0 sm:$0xff] }
  0x14   : > { %714 = vmatprep.subr.bf16.mxu0 %v1093_v15  ;;  %v1121_v36 = vld [vmem:[%s1330_s3 + $0xac] ss:$12 sps:$4 sm:$0xff]   ;;  %vm529_vm3 = vcmask 1043456   ;;  %vm530_vm4 = vsmask.f32 7938  ;;  %vm536_vm8 = vcmask 1040384  }
  0x15   : > { %1038 = vmatpush3.bf16.msra.mxu1 %v1088_v12  ;;  %vm531_vm5 = vmand %vm529_vm3, %vm530_vm4  ;;  %v532_v11 = vld [vmem:[#allocation2] sm:$0xf]  ;;  %vm506_vm6 = vsmask.f32 256  ;;  %vm507_vm7 = vsmask.f32 4368 }
  0x16   : > { %976 = vmatmul.mubr.msk.bf16.vlgmr.msra.gmra.mrb[0].mxu0 %vm355_vm0, %v1089_v13  ;;  %1043 = vmatprep.subr.bf16.mxu1 %v1094_v17  ;;  %vm508_vm9 = vmor %vm506_vm6, %vm507_vm7  ;;  %s1012_s13 = sshll.u32 %s1335_s22, 4  ;;  %s961_s17 = sshll.u32 %s1335_s22, 1 }
  0x17   : > { %404 = vmatprep.mubr.bf16.mxu0 %v1133_v2  ;;  %715 = vmatpush1.bf16.msra.mxu0 %v1091_v16  ;;  %vm537_vm10 = vmand %vm536_vm8, %vm506_vm6  ;;  %s258_s16 = scalar_lea.vmem %s1332_s5, %s1012_s13  ;;  %s262_s20 = scalar_lea.vmem %s1333_s6, %s961_s17 }
  0x18   : > { %1040 = vmatmul.mubr.msk.bf16.vlgmr.msra.gmra.mrb[0].mxu1 %vm355_vm0, %v1090_v14  ;;  %716 = vmatprep.subr.bf16.mxu0 %v1097_v18  ;;  %v538_v18 = vld [vmem:[#allocation2 + $0x8] sm:$0x1] }
  0x19   : > { %1044 = vmatpush3.bf16.msra.mxu1 %v1094_v17 }
  0x1a   : > { %1045 = vmatprep.subr.bf16.mxu1 %v1098_v20 }
  0x1b   : > { %717 = vmatpush1.bf16.msra.mxu0 %v1095_v19 }
  0x1c   : > { %718 = vmatprep.subr.bf16.mxu0 %v1101_v21 }
  0x1d   : > { %1046 = vmatpush3.bf16.msra.mxu1 %v1098_v20 }
  0x1e   : > { %977 = vmatmul.mubr.msk.bf16.gmra.mrb[4].mxu0 %vm355_vm0, %v1090_v14  ;;  %1047 = vmatprep.subr.bf16.mxu1 %v1102_v23 }
  0x1f   : > { %746 = vmatprep.mubr.bf16.mxu0 %v1133_v2  ;;  %719 = vmatpush1.bf16.msra.mxu0 %v1099_v22 }
  0x20   : > { %720 = vmatprep.subr.bf16.mxu0 %v1105_v24 }
  0x21   : > { %1048 = vmatpush3.bf16.msra.mxu1 %v1102_v23 }
  0x22   : > { %1049 = vmatprep.subr.bf16.mxu1 %v1106_v26 }
  0x23   : > { %721 = vmatpush1.bf16.msra.mxu0 %v1103_v25 }
  0x24   : > { %722 = vmatprep.subr.bf16.mxu0 %v1109_v28 }
  0x25   : > { %1050 = vmatpush3.bf16.msra.mxu1 %v1106_v26 }
  0x26   : > { %1051 = vmatprep.subr.bf16.mxu1 %v1110_v29 }
  0x27   : > { %723 = vmatpush1.bf16.msra.mxu0 %v1107_v27 }
  0x28   : > { %724 = vmatprep.subr.bf16.mxu0 %v1113_v30 }
  0x29   : > { %1052 = vmatpush3.bf16.msra.mxu1 %v1110_v29 }
  0x2a   : > { %1053 = vmatprep.subr.bf16.mxu1 %v1114_v32 }
  0x2b   : > { %725 = vmatpush1.bf16.msra.mxu0 %v1111_v31 }
  0x2c   : > { %726 = vmatprep.subr.bf16.mxu0 %v1117_v33 }
  0x2d   : > { %1054 = vmatpush3.bf16.msra.mxu1 %v1114_v32 }
  0x2e   : > { %1055 = vmatprep.subr.bf16.mxu1 %v1118_v35 }
  0x2f   : > { %727 = vmatpush1.bf16.msra.mxu0 %v1115_v34 }
  0x30   : > { %728 = vmatprep.subr.bf16.mxu0 %v1121_v36 }
  0x31   : > { %1056 = vmatpush3.bf16.msra.mxu1 %v1118_v35 }
  0x32   : > { %1057 = vmatprep.subr.bf16.mxu1 %v1122_v37 }
  0x33   : > { %729 = vmatpush1.bf16.msra.mxu0 %v1119_v38 }
  0x35   : > { %1058 = vmatpush3.bf16.msra.mxu1 %v1122_v37 }
  0xe9   : > { %v396_v39 = vpop.f32.mrb[0].mxu0 }
  0xea   : > { %v398_v40 = vpop.f32.mrb[1].mxu0 }
  0xeb   : > { %v400_v41 = vpop.f32.mrb[2].mxu0  ;;  %v1041_v42 = vpop.f32.mrb[0].mxu1  ;;  %v464_v45 = vrot.slane %v398_v40, 1 }
  0xec   : > { %v402_v43 = vpop.f32.mrb[3].mxu0  ;;  %v446_v44 = vpop.f32.mrb[1].mxu1  ;;  %v480_v46 = vrot.slane %v1041_v42, 2  ;;  %v1009_v42 = vld [vmem:[%s1331_s4] ss:$0 sm:$0xff] }
  0xed   : > { %v465_v47 = vrot.slane %v402_v43, 1  ;;  %v477_v48 = vrot.slane %v446_v44, 2  ;;  %v1042_v49 = vpop.f32.mrb[2].mxu1 }
  0xee   : > { %v449_v50 = vpop.f32.mrb[3].mxu1 }
  0xef   : > { %v466_v51 = vsel %vm463_vm1, %v464_v45, %v465_v47  ;;  %v478_v52 = vrot.slane %v449_v50, 2 }
  0xf0   : > { %v471_v53 = vadd.f32 %v466_v51, %v396_v39 }
  0xf1   : > { %v479_v54 = vsel %vm476_vm2, %v477_v48, %v478_v52  ;;  %v481_v55 = vsel %vm476_vm2, %v478_v52, %v480_v46  ;;  %v406_v57 = vpop.f32.mrb[4].mxu0 }
  0xf2   : > { %v484_v58 = vadd.f32 %v479_v54, %v471_v53  ;;  %v407_v59 = vpop.f32.mrb[5].mxu0 }
  0xf3   : > { %v467_v60 = vrot.slane %v407_v59, 1  ;;  %v409_v61 = vpop.f32.mrb[6].mxu0 }
  0xf4   : > { %v493_v62 = vadd.f32 %v980_v56, %v484_v58  ;;  %v410_v63 = vpop.f32.mrb[7].mxu0 }
  0xf5   : > { %v468_v0 = vsel %vm463_vm1, %v465_v47, %v467_v60 }
  0xf6   : > { %v495_v1 = vmax.f32 %v493_v62, 0.0  ;;  %v472_v3 = vadd.f32 %v468_v0, %v400_v41 }
  0xf8   : > { %v1013_v4 = vpack.c.bf16 %v495_v1, %v495_v1  ;;  %v485_v5 = vadd.f32 %v481_v55, %v472_v3 }
  0xfa   : > { %v510_v6 = vshrl.u32 %v1013_v4, 16  ;;  %v494_v7 = vadd.f32 %v980_v56, %v485_v5  ;;  %v513_v9 = vshll.u32 %v1013_v4, 16 }
  0xfc   : > { %v512_v8 = vrot.slane %v510_v6, 7  ;;  %v496_v10 = vmax.f32 %v494_v7, 0.0 }
  0xfe   : > { %v515_v12 = vor.u32 %v513_v9, %v512_v8  ;;  %v1014_v13 = vpack.c.bf16 %v496_v10, %v496_v10  ;;  %v516_v19 = vrot.slane %v512_v8, 4 }
 0x100   : > { %v533_v14 = vsel %vm531_vm5, %v515_v12, %v532_v11  ;;  %v518_v15 = vshrl.u32 %v1014_v13, 16  ;;  %v521_v17 = vshll.u32 %v1014_v13, 16 }
 0x101   : > { %534 = vst [vmem:[#allocation2] sm:$0xf] %v533_v14 }
 0x102   : > { %v520_v16 = vrot.slane %v518_v15, 7 }
 0x104   : > { %v523_v20 = vor.u32 %v521_v17, %v520_v16  ;;  %v525_v21 = vrot.slane %v520_v16, 4 }
 0x106   : > { %v524_v22 = vsel %vm508_vm9, %v516_v19, %v523_v20  ;;  %v539_v23 = vsel %vm537_vm10, %v525_v21, %v538_v18 }
 0x107   : > { %535 = vst [vmem:[#allocation2 + $0x4] sm:$0xf] %v524_v22  ;;  %540 = vst [vmem:[#allocation2 + $0x8] sm:$0x1] %v539_v23 }
 0x10e   : > { %v1123_v24 = vld [vmem:[#allocation2] sm:$0xff]   ;;  %v1124_v25 = vld [vmem:[#allocation2 + $0x8] ss:$0 sps:$4 sm:$0x11]  }
 0x10f   : > { %747 = vmatmul.mubr.bf16.vlgmr.msra.gmra.mrb[8].mxu0 %v1123_v24  ;;  %1059 = vmatprep.mubr.bf16.mxu1 %v1123_v24 }
 0x110   : > { %1060 = vmatmul.mubr.bf16.vlgmr.msra.gmra.mrb[4].mxu1 %v1124_v25  ;;  %756 = vmatprep.mubr.bf16.mxu0 %v1133_v2 }
 0x117   : > { %757 = vmatmul.mubr.bf16.gmra.mrb[12].mxu0 %v1124_v25 }
 0x1e2   : > { %v748_v26 = vpop.f32.mrb[8].mxu0 }
 0x1e3   : > { %v750_v27 = vpop.f32.mrb[9].mxu0  ;;  %v1061_v28 = vpop.f32.mrb[4].mxu1 }
 0x1e4   : > { %v752_v29 = vpop.f32.mrb[10].mxu0  ;;  %v798_v30 = vpop.f32.mrb[5].mxu1  ;;  %v815_v33 = vrot.slane %v750_v27, 1  ;;  %v830_v36 = vrot.slane %v1061_v28, 2 }
 0x1e5   : > { %v754_v31 = vpop.f32.mrb[11].mxu0  ;;  %v1062_v32 = vpop.f32.mrb[6].mxu1  ;;  %v827_v37 = vrot.slane %v798_v30, 2 }
 0x1e6   : > { %v816_v34 = vrot.slane %v754_v31, 1  ;;  %v801_v35 = vpop.f32.mrb[7].mxu1 }
 0x1e7   : > { %v828_v38 = vrot.slane %v801_v35, 2 }
 0x1e8   : > { %v817_v39 = vsel %vm463_vm1, %v815_v33, %v816_v34 }
 0x1e9   : > { %v822_v40 = vadd.f32 %v817_v39, %v748_v26  ;;  %v829_v2 = vsel %vm476_vm2, %v827_v37, %v828_v38  ;;  %v831_v41 = vsel %vm476_vm2, %v828_v38, %v830_v36 }
 0x1ea   : > { %v758_v43 = vpop.f32.mrb[12].mxu0 }
 0x1eb   : > { %v834_v44 = vadd.f32 %v829_v2, %v822_v40  ;;  %v759_v45 = vpop.f32.mrb[13].mxu0 }
 0x1ec   : > { %v818_v46 = vrot.slane %v759_v45, 1  ;;  %v761_v47 = vpop.f32.mrb[14].mxu0 }
 0x1ed   : > { %v843_v48 = vadd.f32 %v1009_v42, %v834_v44  ;;  %v762_v49 = vpop.f32.mrb[15].mxu0 }
 0x1ee   : > { %v819_v50 = vsel %vm463_vm1, %v816_v34, %v818_v46 }
 0x1ef   : > { %v845_v51 = vmax.f32 %v843_v48, 0.0  ;;  %v823_v52 = vadd.f32 %v819_v50, %v752_v29 }
 0x1f1   : > { %847 = vst [vmem:[%s258_s16] sm:$0xff] %v845_v51  ;;  %v835_v53 = vadd.f32 %v831_v41, %v823_v52  ;;  %v857_v56 = vmul.f32 %v845_v51, %v845_v51 }
 0x1f3   : > { %v844_v54 = vadd.f32 %v1009_v42, %v835_v53 }
 0x1f5   : > { %v846_v55 = vmax.f32 %v844_v54, 0.0 }
 0x1f7   : > { %848 = vst [vmem:[%s258_s16 + $0x8] sm:$0xff] %v846_v55  ;;  %v849_v57 = vadd.f32 %v846_v55, %v845_v51  ;;  %v858_v58 = vmul.f32 %v846_v55, %v846_v55 }
 0x1f9   : > { %v850_v59 = vrot.slane %v849_v57, 4  ;;  %v859_v60 = vadd.f32 %v858_v58, %v857_v56 }
 0x1fb   : > { %v851_v61 = vadd.f32 %v850_v59, %v849_v57  ;;  %v860_v62 = vrot.slane %v859_v60, 4 }
 0x1fd   : > { %v852_v63 = vrot.slane %v851_v61, 2  ;;  %v861_v0 = vadd.f32 %v860_v62, %v859_v60 }
 0x1ff   : > { %v853_v1 = vadd.f32 %v852_v63, %v851_v61  ;;  %v862_v3 = vrot.slane %v861_v0, 2 }
 0x201   : > { %v854_v4 = vrot.slane %v853_v1, 1  ;;  %v863_v5 = vadd.f32 %v862_v3, %v861_v0 }
 0x203   : > { %v855_v6 = vadd.f32 %v854_v4, %v853_v1  ;;  %v864_v7 = vrot.slane %v863_v5, 1 }
 0x205   : > { %856 = vst [vmem:[%s262_s20] sm:$0x1] %v855_v6  ;;  %v865_v8 = vadd.f32 %v864_v7, %v863_v5 }
 0x207   : > { %866 = vst [vmem:[%s262_s20 + $0x1] sm:$0x1] %v865_v8 }
 0x208 PF: > { %s17_s21 = sadd.s32 1, %s1131_s21  }
 0x209   : > { %p14_p4 = scmp.ge.s32.totalorder %s17_s21, 4  }
 0x20b   :  { %16 = sbr.rel (!%p14_p4) target bundleno = 1 (0x1), region = 82 }

</bundles_post_ra>
